<compile_context>
chip_gen: v7x
topology: tpu7x:2x2x1
jax: 0.10.0
libtpu: 0.0.40
codegen_flags: <defaults>
</compile_context>

<pallas_src>
import functools
import math
from typing import NamedTuple

import jax
import jax.numpy as jnp
from jax import lax
from jax.experimental import pallas as pl
from jax.experimental.pallas import tpu as pltpu


# ---------------------------------------------------------------------------
# Kernel 1: Q/K/V projections (run ONCE per (batch, seq-block); 1/sqrt(dim_q)
# folded into Q).
# ---------------------------------------------------------------------------
def qkv_projection_kernel(xq_ref, xk_ref, xv_ref,
                          wq_ref, bq_ref, wk_ref, bk_ref, wv_ref, bv_ref,
                          qo_ref, ko_ref, vo_ref, *, inv_scale: float):
    xq = xq_ref[0]            # (block_s, dim_in) bf16
    xk = xk_ref[0]
    xv = xv_ref[0]

    # bf16 MXU matmuls, f32 accumulation, f32 bias add.
    q_p = jnp.dot(xq, wq_ref[...], preferred_element_type=jnp.float32) + bq_ref[...]
    k_p = jnp.dot(xk, wk_ref[...], preferred_element_type=jnp.float32) + bk_ref[...]
    v_p = jnp.dot(xv, wv_ref[...], preferred_element_type=jnp.float32) + bv_ref[...]

    # Fold 1/sqrt(dim_q) into Q once here (instead of per (q,kv) score tile).
    qo_ref[0] = (q_p * inv_scale).astype(qo_ref.dtype)
    ko_ref[0] = k_p.astype(ko_ref.dtype)
    vo_ref[0] = v_p.astype(vo_ref.dtype)


# ---------------------------------------------------------------------------
# Kernel 2: flash attention over pre-projected Q / K^T / V.
#   grid = (B, n_q, n_kv), kv innermost ("arbitrary"), online softmax.
# ---------------------------------------------------------------------------
def flash_attention_kernel(q_ref, kT_ref, v_ref, o_ref,
                           m_sc, l_sc, acc_sc, *,
                           add_mask: bool, block_q: int, block_kv: int,
                           seq_len: int, seq_pad: int):
    qi = pl.program_id(1)
    kv = pl.program_id(2)
    n_kv = pl.num_programs(2)

    @pl.when(kv == 0)
    def _init():
        m_sc[...] = jnp.full_like(m_sc, -jnp.inf)
        l_sc[...] = jnp.zeros_like(l_sc)
        acc_sc[...] = jnp.zeros_like(acc_sc)

    def compute():
        q = q_ref[0]              # (block_q, d_pad) bf16, pre-scaled
        kT = kT_ref[0]            # (d_pad, block_kv) bf16 (pre-transposed)
        v = v_ref[0]              # (block_kv, d_pad) bf16

        # Plain leading-dim contraction — no per-step transpose.
        s = jnp.dot(q, kT, preferred_element_type=jnp.float32)  # (bq, bkv) f32

        if add_mask or (seq_pad != seq_len):
            rows = lax.broadcasted_iota(jnp.int32, s.shape, 0) + qi * block_q
            cols = lax.broadcasted_iota(jnp.int32, s.shape, 1) + kv * block_kv
            if add_mask and (seq_pad != seq_len):
                keep = jnp.logical_and(cols <= rows, cols < seq_len)
            elif add_mask:
                keep = cols <= rows
            else:
                keep = cols < seq_len
            # Single select; key column 0 is always valid so every row keeps at
            # least one finite score (matches the -inf-mask reference).
            s = jnp.where(keep, s, jnp.finfo(jnp.float32).min)

        m_prev = m_sc[...]
        m_new = jnp.maximum(m_prev, jnp.max(s, axis=-1, keepdims=True))
        alpha = jnp.exp(m_prev - m_new)
        p = jnp.exp(s - m_new)
        l_sc[...] = alpha * l_sc[...] + jnp.sum(p, axis=-1, keepdims=True)
        acc_sc[...] = alpha * acc_sc[...] + jnp.dot(
            p.astype(jnp.bfloat16), v, preferred_element_type=jnp.float32)
        m_sc[...] = m_new

    if add_mask:
        # Skip KV blocks that lie entirely in the causally-masked future.
        @pl.when(kv * block_kv <= (qi + 1) * block_q - 1)
        def _():
            compute()
    else:
        compute()

    @pl.when(kv == n_kv - 1)
    def _finalize():
        # Deferred normalization: one (block_q, d_pad) multiply, EUP reciprocal.
        o_ref[0] = (acc_sc[...] * pl.reciprocal(l_sc[...], approx=True)
                    ).astype(o_ref.dtype)


# ---------------------------------------------------------------------------
# Wrapper
# ---------------------------------------------------------------------------
def _round_up(x: int, m: int) -> int:
    return (x + m - 1) // m * m


def _vmem_limit_bytes() -> int:
    # Generation-aware VMEM budget with headroom: ~48 MiB on v7x (64 MiB
    # physical), ~96 MiB on v5e/v6e (128 MiB physical).
    default_cap = 64 * 1024 * 1024
    try:
        info = pltpu.get_tpu_info()
        cap = int(getattr(info, "vmem_capacity_bytes", default_cap))
    except Exception:
        cap = default_cap
    return max(32 * 1024 * 1024, min(cap * 3 // 4, 96 * 1024 * 1024))


class PreparedParams(NamedTuple):
    wq: jax.Array
    bq: jax.Array
    wk: jax.Array
    bk: jax.Array
    wv: jax.Array
    bv: jax.Array
    dim_q: int
    dim_k: int
    d_pad: int


def prepare_params(params) -> PreparedParams:
    """Pad head dims to a lane-dense multiple of 128 and cast — done ONCE."""
    wq, bq, wk, bk, wv, bv = params
    dim_q = wq.shape[1]
    dim_k = wk.shape[1]
    assert dim_q == dim_k, "QK^T requires dim_q == dim_k (as in the PyTorch bmm)"
    d_pad = _round_up(max(dim_q, dim_k), 128)

    def pad_w(w):
        return jnp.pad(w, ((0, 0), (0, d_pad - w.shape[1]))).astype(jnp.bfloat16)

    def pad_b(b):
        return jnp.pad(b, ((0, 0), (0, d_pad - b.shape[1]))).astype(jnp.float32)

    return PreparedParams(pad_w(wq), pad_b(bq), pad_w(wk), pad_b(bk),
                          pad_w(wv), pad_b(bv), dim_q, dim_k, d_pad)


def attention_head(query, key, value, prep: PreparedParams, *, add_mask: bool):
    """query/key/value: (B, S, dim_in) float32. Returns (B, S, dim_k) float32."""
    B, S, dim_in = query.shape
    d_pad, dim_q, dim_k = prep.d_pad, prep.dim_q, prep.dim_k

    # One block size for q / kv / projection tiling; capped at 256 (v7x-safe),
    # and the sequence is padded to a block multiple (handles arbitrary S).
    blk = 256 if S >= 256 else _round_up(S, 8)
    S_pad = _round_up(S, blk)
    n_blk = S_pad // blk

    def to_bf16_padded(x):
        x = x.astype(jnp.bfloat16)
        if S_pad != S:
            x = jnp.pad(x, ((0, 0), (0, S_pad - S), (0, 0)))
        return x

    q_bf = to_bf16_padded(query)
    k_bf = to_bf16_padded(key)
    v_bf = to_bf16_padded(value)

    vmem_limit = _vmem_limit_bytes()
    inv_scale = 1.0 / (dim_q ** 0.5)          # scale uses the *unpadded* dim_q

    # ---- 1) Q/K/V projections: once per (batch, seq block) -----------------
    x_spec = pl.BlockSpec((1, blk, dim_in), lambda b, si: (b, si, 0))
    w_spec = pl.BlockSpec((dim_in, d_pad), lambda b, si: (0, 0))
    b_spec = pl.BlockSpec((1, d_pad), lambda b, si: (0, 0))
    p_out_spec = pl.BlockSpec((1, blk, d_pad), lambda b, si: (b, si, 0))

    q_p, k_p, v_p = pl.pallas_call(
        functools.partial(qkv_projection_kernel, inv_scale=inv_scale),
        out_shape=(
            jax.ShapeDtypeStruct((B, S_pad, d_pad), jnp.bfloat16),
            jax.ShapeDtypeStruct((B, S_pad, d_pad), jnp.bfloat16),
            jax.ShapeDtypeStruct((B, S_pad, d_pad), jnp.bfloat16),
        ),
        grid_spec=pltpu.PrefetchScalarGridSpec(
            num_scalar_prefetch=0,
            grid=(B, n_blk),
            in_specs=[x_spec, x_spec, x_spec,
                      w_spec, b_spec, w_spec, b_spec, w_spec, b_spec],
            out_specs=(p_out_spec, p_out_spec, p_out_spec),
        ),
        compiler_params=pltpu.CompilerParams(
            dimension_semantics=("parallel", "parallel"),
            vmem_limit_bytes=vmem_limit),
    )(q_bf, k_bf, v_bf, prep.wq, prep.bq, prep.wk, prep.bk, prep.wv, prep.bv)

    # Pre-transpose K once (cheap XLA pass) so the attention kernel contracts
    # on K^T's leading dim — no per-(qi,kv)-step transpose inside the kernel.
    k_pT = jnp.swapaxes(k_p, 1, 2)            # (B, d_pad, S_pad) bf16

    # ---- 2) Flash attention over the projected tensors ---------------------
    kernel = functools.partial(
        flash_attention_kernel, add_mask=add_mask, block_q=blk, block_kv=blk,
        seq_len=S, seq_pad=S_pad)

    out_pad = pl.pallas_call(
        kernel,
        out_shape=jax.ShapeDtypeStruct((B, S_pad, d_pad), jnp.float32),
        grid_spec=pltpu.PrefetchScalarGridSpec(
            num_scalar_prefetch=0,
            grid=(B, n_blk, n_blk),
            in_specs=[
                pl.BlockSpec((1, blk, d_pad), lambda b, qi, kv: (b, qi, 0)),   # Q tile
                pl.BlockSpec((1, d_pad, blk), lambda b, qi, kv: (b, 0, kv)),   # K^T tile
                pl.BlockSpec((1, blk, d_pad), lambda b, qi, kv: (b, kv, 0)),   # V tile
            ],
            out_specs=pl.BlockSpec((1, blk, d_pad), lambda b, qi, kv: (b, qi, 0)),
            scratch_shapes=[
                pltpu.VMEM((blk, 1), jnp.float32),       # running max m
                pltpu.VMEM((blk, 1), jnp.float32),       # running denom l
                pltpu.VMEM((blk, d_pad), jnp.float32),   # un-normalized acc
            ],
        ),
        compiler_params=pltpu.CompilerParams(
            dimension_semantics=("parallel", "parallel", "arbitrary"),
            vmem_limit_bytes=vmem_limit),
    )(q_p, k_pT, v_p)

    return out_pad[:, :S, :dim_k]


# ---------------------------------------------------------------------------
# Pure-JAX f32 reference (mirrors the PyTorch module) + init
# ---------------------------------------------------------------------------
def reference_attention_head(query, key, value, params, *, add_mask: bool):
    wq, bq, wk, bk, wv, bv = params
    q_p = query @ wq + bq
    k_p = key @ wk + bk
    v_p = value @ wv + bv
    temp = jnp.einsum("bqd,bkd->bqk", q_p, k_p)
    if add_mask:
        s = temp.shape[2]
        row = jnp.arange(s)[:, None]
        col = jnp.arange(s)[None, :]
        mask = jnp.where(col <= row, 0.0, -jnp.inf)
        temp = temp + mask
    scale = q_p.shape[-1] ** 0.5
    probs = jax.nn.softmax(temp / scale, axis=-1)
    return jnp.einsum("bqk,bkd->bqd", probs, v_p)


def init_params(key, dim_in, dim_q, dim_k):
    """Deterministic nn.Linear-style init (uniform in +/- 1/sqrt(dim_in))."""
    keys = jax.random.split(key, 6)
    bound = 1.0 / math.sqrt(dim_in)
    u = lambda k, shape: jax.random.uniform(k, shape, jnp.float32, -bound, bound)
    wq = u(keys[0], (dim_in, dim_q))
    bq = u(keys[1], (1, dim_q))
    wk = u(keys[2], (dim_in, dim_k))
    bk = u(keys[3], (1, dim_k))
    wv = u(keys[4], (dim_in, dim_k))
    bv = u(keys[5], (1, dim_k))
    return (wq, bq, wk, bk, wv, bv)


if __name__ == "__main__":
    B, S, dim_in, dim_q, dim_k = 2, 8, 32, 16, 16
    add_mask = True

    root = jax.random.PRNGKey(0)
    k_q, k_k, k_v, k_p = jax.random.split(root, 4)
    query = jax.random.normal(k_q, (B, S, dim_in), jnp.float32)
    key = jax.random.normal(k_k, (B, S, dim_in), jnp.float32)
    value = jax.random.normal(k_v, (B, S, dim_in), jnp.float32)
    params = init_params(k_p, dim_in, dim_q, dim_k)

    prep = prepare_params(params)   # pad/cast weights ONCE, not per call
    out = attention_head(query, key, value, prep, add_mask=add_mask)
    out = jax.block_until_ready(out)

    ref = reference_attention_head(query, key, value, params, add_mask=add_mask)
    assert out.shape == (B, S, dim_k)
    # bf16 MXU matmuls + approx reciprocal: compare to f32 reference with a
    # bf16-appropriate tolerance (documented accuracy contract).
    assert jnp.allclose(out, ref, atol=2e-2, rtol=2e-2), "mismatch vs reference"

    print("KERNEL_OK")
</pallas_src>

<mosaic_0001>
module attributes {stable_mosaic.version = 11 : i64} {
  func.func @qkv_projection_kernel(%arg0: i32, %arg1: i32, %arg2: memref<1x8x32xbf16, #tpu.memory_space<vmem>>, %arg3: memref<1x8x32xbf16, #tpu.memory_space<vmem>>, %arg4: memref<1x8x32xbf16, #tpu.memory_space<vmem>>, %arg5: memref<32x128xbf16, #tpu.memory_space<vmem>>, %arg6: memref<1x128xf32, #tpu.memory_space<vmem>>, %arg7: memref<32x128xbf16, #tpu.memory_space<vmem>>, %arg8: memref<1x128xf32, #tpu.memory_space<vmem>>, %arg9: memref<32x128xbf16, #tpu.memory_space<vmem>>, %arg10: memref<1x128xf32, #tpu.memory_space<vmem>>, %arg11: memref<1x8x128xbf16, #tpu.memory_space<vmem>>, %arg12: memref<1x8x128xbf16, #tpu.memory_space<vmem>>, %arg13: memref<1x8x128xbf16, #tpu.memory_space<vmem>>) attributes {dimension_semantics = [#tpu.dimension_semantics<parallel>, #tpu.dimension_semantics<parallel>], iteration_bounds = array<i64: 2, 1>, scalar_prefetch = 0 : i64, scratch_operands = 0 : i64, tpu.core_type = #tpu.core_type<tc>, window_params = [{transform_indices = @transform_0, window_bounds = array<i64: 1, 8, 32>}, {transform_indices = @transform_1, window_bounds = array<i64: 1, 8, 32>}, {transform_indices = @transform_2, window_bounds = array<i64: 1, 8, 32>}, {pipeline_mode = #tpu.pipeline_mode<synchronous>, transform_indices = @transform_3, window_bounds = array<i64: 32, 128>}, {pipeline_mode = #tpu.pipeline_mode<synchronous>, transform_indices = @transform_4, window_bounds = array<i64: 1, 128>}, {pipeline_mode = #tpu.pipeline_mode<synchronous>, transform_indices = @transform_5, window_bounds = array<i64: 32, 128>}, {pipeline_mode = #tpu.pipeline_mode<synchronous>, transform_indices = @transform_6, window_bounds = array<i64: 1, 128>}, {pipeline_mode = #tpu.pipeline_mode<synchronous>, transform_indices = @transform_7, window_bounds = array<i64: 32, 128>}, {pipeline_mode = #tpu.pipeline_mode<synchronous>, transform_indices = @transform_8, window_bounds = array<i64: 1, 128>}, {transform_indices = @transform_9, window_bounds = array<i64: 1, 8, 128>}, {transform_indices = @transform_10, window_bounds = array<i64: 1, 8, 128>}, {transform_indices = @transform_11, window_bounds = array<i64: 1, 8, 128>}]} {
    %c0 = arith.constant 0 : index
    %c0_0 = arith.constant 0 : index
    %c0_1 = arith.constant 0 : index
    %0 = vector.load %arg2[%c0, %c0_0, %c0_1] : memref<1x8x32xbf16, #tpu.memory_space<vmem>>, vector<1x8x32xbf16>
    %1 = vector.shape_cast %0 : vector<1x8x32xbf16> to vector<8x32xbf16>
    %c0_2 = arith.constant 0 : index
    %c0_3 = arith.constant 0 : index
    %c0_4 = arith.constant 0 : index
    %2 = vector.load %arg3[%c0_2, %c0_3, %c0_4] : memref<1x8x32xbf16, #tpu.memory_space<vmem>>, vector<1x8x32xbf16>
    %3 = vector.shape_cast %2 : vector<1x8x32xbf16> to vector<8x32xbf16>
    %c0_5 = arith.constant 0 : index
    %c0_6 = arith.constant 0 : index
    %c0_7 = arith.constant 0 : index
    %4 = vector.load %arg4[%c0_5, %c0_6, %c0_7] : memref<1x8x32xbf16, #tpu.memory_space<vmem>>, vector<1x8x32xbf16>
    %5 = vector.shape_cast %4 : vector<1x8x32xbf16> to vector<8x32xbf16>
    %c0_8 = arith.constant 0 : index
    %c0_9 = arith.constant 0 : index
    %6 = vector.load %arg5[%c0_8, %c0_9] : memref<32x128xbf16, #tpu.memory_space<vmem>>, vector<32x128xbf16>
    %cst = arith.constant dense<0.000000e+00> : vector<8x128xf32>
    %7 = tpu.matmul %1, %6, %cst {dimension_numbers = #tpu.dot_dimension_numbers<[1], [0], [0], [1], [0, 0, 1, 1], [], []>} : vector<8x32xbf16>, vector<32x128xbf16>, vector<8x128xf32> -> vector<8x128xf32>
    %c0_10 = arith.constant 0 : index
    %c0_11 = arith.constant 0 : index
    %8 = vector.load %arg6[%c0_10, %c0_11] : memref<1x128xf32, #tpu.memory_space<vmem>>, vector<1x128xf32>
    %9 = vector.broadcast %8 : vector<1x128xf32> to vector<8x128xf32>
    %10 = arith.addf %7, %9 : vector<8x128xf32>
    %c0_12 = arith.constant 0 : index
    %c0_13 = arith.constant 0 : index
    %11 = vector.load %arg7[%c0_12, %c0_13] : memref<32x128xbf16, #tpu.memory_space<vmem>>, vector<32x128xbf16>
    %cst_14 = arith.constant dense<0.000000e+00> : vector<8x128xf32>
    %12 = tpu.matmul %3, %11, %cst_14 {dimension_numbers = #tpu.dot_dimension_numbers<[1], [0], [0], [1], [0, 0, 1, 1], [], []>} : vector<8x32xbf16>, vector<32x128xbf16>, vector<8x128xf32> -> vector<8x128xf32>
    %c0_15 = arith.constant 0 : index
    %c0_16 = arith.constant 0 : index
    %13 = vector.load %arg8[%c0_15, %c0_16] : memref<1x128xf32, #tpu.memory_space<vmem>>, vector<1x128xf32>
    %14 = vector.broadcast %13 : vector<1x128xf32> to vector<8x128xf32>
    %15 = arith.addf %12, %14 : vector<8x128xf32>
    %c0_17 = arith.constant 0 : index
    %c0_18 = arith.constant 0 : index
    %16 = vector.load %arg9[%c0_17, %c0_18] : memref<32x128xbf16, #tpu.memory_space<vmem>>, vector<32x128xbf16>
    %cst_19 = arith.constant dense<0.000000e+00> : vector<8x128xf32>
    %17 = tpu.matmul %5, %16, %cst_19 {dimension_numbers = #tpu.dot_dimension_numbers<[1], [0], [0], [1], [0, 0, 1, 1], [], []>} : vector<8x32xbf16>, vector<32x128xbf16>, vector<8x128xf32> -> vector<8x128xf32>
    %c0_20 = arith.constant 0 : index
    %c0_21 = arith.constant 0 : index
    %18 = vector.load %arg10[%c0_20, %c0_21] : memref<1x128xf32, #tpu.memory_space<vmem>>, vector<1x128xf32>
    %19 = vector.broadcast %18 : vector<1x128xf32> to vector<8x128xf32>
    %20 = arith.addf %17, %19 : vector<8x128xf32>
    %cst_22 = arith.constant 2.500000e-01 : f32
    %21 = vector.broadcast %cst_22 : f32 to vector<8x128xf32>
    %22 = arith.mulf %10, %21 : vector<8x128xf32>
    %23 = arith.truncf %22 : vector<8x128xf32> to vector<8x128xbf16>
    %c0_23 = arith.constant 0 : index
    %c0_24 = arith.constant 0 : index
    %c0_25 = arith.constant 0 : index
    %24 = vector.load %arg11[%c0_23, %c0_24, %c0_25] : memref<1x8x128xbf16, #tpu.memory_space<vmem>>, vector<1x8x128xbf16>
    %25 = vector.shape_cast %24 : vector<1x8x128xbf16> to vector<8x128xbf16>
    %26 = vector.shape_cast %23 : vector<8x128xbf16> to vector<1x8x128xbf16>
    tpu.vector_store %arg11[%c0_23, %c0_24, %c0_25], %26 {strides = array<i32>} : memref<1x8x128xbf16, #tpu.memory_space<vmem>>, vector<1x8x128xbf16>,
    %27 = arith.truncf %15 : vector<8x128xf32> to vector<8x128xbf16>
    %c0_26 = arith.constant 0 : index
    %c0_27 = arith.constant 0 : index
    %c0_28 = arith.constant 0 : index
    %28 = vector.load %arg12[%c0_26, %c0_27, %c0_28] : memref<1x8x128xbf16, #tpu.memory_space<vmem>>, vector<1x8x128xbf16>
    %29 = vector.shape_cast %28 : vector<1x8x128xbf16> to vector<8x128xbf16>
    %30 = vector.shape_cast %27 : vector<8x128xbf16> to vector<1x8x128xbf16>
    tpu.vector_store %arg12[%c0_26, %c0_27, %c0_28], %30 {strides = array<i32>} : memref<1x8x128xbf16, #tpu.memory_space<vmem>>, vector<1x8x128xbf16>,
    %31 = arith.truncf %20 : vector<8x128xf32> to vector<8x128xbf16>
    %c0_29 = arith.constant 0 : index
    %c0_30 = arith.constant 0 : index
    %c0_31 = arith.constant 0 : index
    %32 = vector.load %arg13[%c0_29, %c0_30, %c0_31] : memref<1x8x128xbf16, #tpu.memory_space<vmem>>, vector<1x8x128xbf16>
    %33 = vector.shape_cast %32 : vector<1x8x128xbf16> to vector<8x128xbf16>
    %34 = vector.shape_cast %31 : vector<8x128xbf16> to vector<1x8x128xbf16>
    tpu.vector_store %arg13[%c0_29, %c0_30, %c0_31], %34 {strides = array<i32>} : memref<1x8x128xbf16, #tpu.memory_space<vmem>>, vector<1x8x128xbf16>,
    return
  }
  func.func @transform_0(%arg0: i32, %arg1: i32) -> (i32, i32, i32) {
    %c0_i32 = arith.constant 0 : i32
    %c0_i32_0 = arith.constant 0 : i32
    return %arg0, %arg1, %c0_i32 : i32, i32, i32
  }
  func.func @transform_1(%arg0: i32, %arg1: i32) -> (i32, i32, i32) {
    %c0_i32 = arith.constant 0 : i32
    %c0_i32_0 = arith.constant 0 : i32
    return %arg0, %arg1, %c0_i32 : i32, i32, i32
  }
  func.func @transform_2(%arg0: i32, %arg1: i32) -> (i32, i32, i32) {
    %c0_i32 = arith.constant 0 : i32
    %c0_i32_0 = arith.constant 0 : i32
    return %arg0, %arg1, %c0_i32 : i32, i32, i32
  }
  func.func @transform_3(%arg0: i32, %arg1: i32) -> (i32, i32) {
    %c0_i32 = arith.constant 0 : i32
    %c0_i32_0 = arith.constant 0 : i32
    %c0_i32_1 = arith.constant 0 : i32
    return %c0_i32, %c0_i32_0 : i32, i32
  }
  func.func @transform_4(%arg0: i32, %arg1: i32) -> (i32, i32) {
    %c0_i32 = arith.constant 0 : i32
    %c0_i32_0 = arith.constant 0 : i32
    %c0_i32_1 = arith.constant 0 : i32
    return %c0_i32, %c0_i32_0 : i32, i32
  }
  func.func @transform_5(%arg0: i32, %arg1: i32) -> (i32, i32) {
    %c0_i32 = arith.constant 0 : i32
    %c0_i32_0 = arith.constant 0 : i32
    %c0_i32_1 = arith.constant 0 : i32
    return %c0_i32, %c0_i32_0 : i32, i32
  }
  func.func @transform_6(%arg0: i32, %arg1: i32) -> (i32, i32) {
    %c0_i32 = arith.constant 0 : i32
    %c0_i32_0 = arith.constant 0 : i32
    %c0_i32_1 = arith.constant 0 : i32
    return %c0_i32, %c0_i32_0 : i32, i32
  }
  func.func @transform_7(%arg0: i32, %arg1: i32) -> (i32, i32) {
    %c0_i32 = arith.constant 0 : i32
    %c0_i32_0 = arith.constant 0 : i32
    %c0_i32_1 = arith.constant 0 : i32
    return %c0_i32, %c0_i32_0 : i32, i32
  }
  func.func @transform_8(%arg0: i32, %arg1: i32) -> (i32, i32) {
    %c0_i32 = arith.constant 0 : i32
    %c0_i32_0 = arith.constant 0 : i32
    %c0_i32_1 = arith.constant 0 : i32
    return %c0_i32, %c0_i32_0 : i32, i32
  }
  func.func @transform_9(%arg0: i32, %arg1: i32) -> (i32, i32, i32) {
    %c0_i32 = arith.constant 0 : i32
    %c0_i32_0 = arith.constant 0 : i32
    return %arg0, %arg1, %c0_i32 : i32, i32, i32
  }
  func.func @transform_10(%arg0: i32, %arg1: i32) -> (i32, i32, i32) {
    %c0_i32 = arith.constant 0 : i32
    %c0_i32_0 = arith.constant 0 : i32
    return %arg0, %arg1, %c0_i32 : i32, i32, i32
  }
  func.func @transform_11(%arg0: i32, %arg1: i32) -> (i32, i32, i32) {
    %c0_i32 = arith.constant 0 : i32
    %c0_i32_0 = arith.constant 0 : i32
    return %arg0, %arg1, %c0_i32 : i32, i32, i32
  }
}

</mosaic_0001>

<bundles_post_ra>
// kernel: tpu_custom_call.1
= control target key start
LH: loop header
LB: loop body
LE: loop exit
PB: predicated region body
PF: predicated region fallthrough
CT: control target
= control target key end

     0   :  { %s1991_s0 = inlined_call_operand.hbm [shape: bf16[2,8,32], index: 0, kind: input, shape index: {}]   ;;  %s1992_s1 = inlined_call_operand.hbm [shape: bf16[2,8,32], index: 1, kind: input, shape index: {}]   ;;  %s1993_s2 = inlined_call_operand.hbm [shape: bf16[2,8,32], index: 2, kind: input, shape index: {}]   ;;  %s1994_s3 = inlined_call_operand.hbm [shape: bf16[32,128], index: 3, kind: input, shape index: {}]   ;;  %s1995_s4 = inlined_call_operand.vmem [shape: f32[1,128], index: 4, kind: input, shape index: {}]   ;;  %s1996_s5 = inlined_call_operand.vmem [shape: bf16[32,128], index: 5, kind: input, shape index: {}]   ;;  %s1997_s6 = inlined_call_operand.vmem [shape: f32[1,128], index: 6, kind: input, shape index: {}]   ;;  %s1998_s7 = inlined_call_operand.hbm [shape: bf16[32,128], index: 7, kind: input, shape index: {}]   ;;  %s1999_s8 = inlined_call_operand.vmem [shape: f32[1,128], index: 8, kind: input, shape index: {}]   ;;  %s2000_s9 = inlined_call_operand.hbm [shape: bf16[2,8,128], index: 9, kind: output, shape index: {0}]   ;;  %s2001_s10 = inlined_call_operand.hbm [shape: bf16[2,8,128], index: 10, kind: output, shape index: {1}]   ;;  %s2002_s11 = inlined_call_operand.hbm [shape: bf16[2,8,128], index: 11, kind: output, shape index: {2}]  }
   0x1   :  { %2026 = sst [smem:[#allocation26_spill]] %s1992_s1 }
   0x2   :  { %2027 = sst [smem:[#allocation27_spill]] %s1994_s3 }
   0x3   :  { %2028 = sst [smem:[#allocation28_spill]] %s1998_s7 }
   0x4   :  { %2029 = sst [smem:[#allocation29_spill]] %s1999_s8 }
   0x5   :  { %2030 = sst [smem:[#allocation30_spill]] %s2000_s9 }
   0x6   :  { %2031 = sst [smem:[#allocation31_spill]] %s2002_s11 }
   0x7   :  { %17 = vsyncpa [#allocation3], 0 }
   0x8   :  { %19 = vsyncpa [#allocation3 + $0x1], 0 }
   0x9   :  { %20 = vsyncpa [#allocation6], 0 }
   0xa   :  { %22 = vsyncpa [#allocation6 + $0x1], 0 }
   0xb   :  { %23 = vsyncpa [#allocation9], 0 }
   0xc   :  { %24 = vsyncpa [#allocation4], 0 }
   0xd   :  { %26 = vsyncpa [#allocation4 + $0x1], 0 }
   0xe   :  { %27 = vsyncpa [#allocation13], 0 }
   0xf   :  { %29 = vsyncpa [#allocation13 + $0x1], 0  ;;  %s1574_s17 = smov 0   ;;  %s1576_s18 = smov 0  }
  0x10   :  { %s1578_s19 = smov 0   ;;  %s1580_s20 = smov 0  }
  0x11   :  { %s1582_s21 = smov 0   ;;  %s1584_s22 = smov 0  }
  0x12 LB: > { %2032 = sst [smem:[#allocation20_spill]] %s1480_s17  ;;  %s1605_s23 = sadd.s32 4294967295, %s1500_s22   ;;  %s1500_s22 = sphi %s1584_s22, %s35_s22   ;;  %s1496_s21 = sphi %s1582_s21, %s2075_s21   ;;  %s1492_s20 = sphi %s1580_s20, %s2074_s20   ;;  %s1488_s19 = sphi %s1578_s19, %s2078_s19   ;;  %s1484_s18 = sphi %s1576_s18, %s2077_s18   ;;  %s1480_s17 = sphi %s1574_s17, %s2076_s17  }
  0x13   : > { %2033 = sst [smem:[#allocation21_spill]] %s1496_s21  ;;  %s2003_s24 = sadd.s32 4294967294, %s1500_s22  }
  0x14   : > { %2034 = sst [smem:[#allocation22_spill]] %s1500_s22  ;;  %p69_p0 = scmp.ne.s32.totalorder %s1484_s18, %s1480_s17 }
  0x15   : > { %p2006_p1 = scmp.eq.s32.totalorder %s1605_s23, 0  ;;  %p283_p3 = scmp.eq.s32.totalorder %s2003_s24, 1 }
  0x16   : > { %p1019_p5 = scmp.ge.s32.totalorder %s1500_s22, 1  ;;  %p346_p7 = scmp.lt.s32.totalorder %s1500_s22, 3 }
  0x17   : > { %p1616_p4 = por %p2006_p1, %p69_p0  ;;  %p1621_p6 = por %p283_p3, %p69_p0 }
  0x18   : > { %p1626_p8 = pnand %p1019_p5, %p346_p7  ;;  %s1502_s28 = smov [#allocation8]  }
  0x19   : > { %s2035_s25 = scalar_select %p1616_p4, 1, 0 }
  0x1a   : > { %s2036_s26 = scalar_select %p1621_p6, 1, 0 }
  0x1b   : > { %s2038_s27 = scalar_select %p1626_p8, 1, 0 }
  0x1c   : > { %2037 = sst [smem:[#allocation23_spill]] %s2036_s26  ;;  %s358_s29 = sshll.u32 %s1502_s28, 4  ;;  %s359_s29 = int_to_ptr.vmem [resolvable:$true] %s358_s29 }
  0x1d   : > { %p1111_p9 = pneg %p1626_p8  ;;  %s47_s12 = sadd.s32 1, %s1496_s21 }
  0x1e   : > { %s2040_s3 = sld [smem:[#allocation27_spill]] }
  0x1f   : > { %p1635_p11 = pnand %p1111_p9, %p2006_p1 }
  0x21   : > { %s2039_s30 = scalar_select %p1635_p11, 1, 0 }
  0x22   : > { %p2018_p13 = pneg %p1635_p11 }
  0x24   : > { %s1204_s15 = scalar_lea.hbm %s2040_s3, 256 }
  0x25   : > { %p1205_p12 = scmp.ne.s32.totalorder %s2040_s3, %s1204_s15  ;;  %p1211_p5 = scmp.lt.u32.totalorder %s1204_s15, %s2040_s3 }
  0x27   : > { %p1207_p0 = pnand %p2018_p13, %p1205_p12 }
  0x29   : > { %p1208_p3 = pneg %p1207_p0 }
  0x2b   : > { %p1213_p7 = pnand %p1211_p5, %p1208_p3 }
  0x2d   : > { %1216 = shalt.err (!%p1213_p7)
}
  0x2e   : > { %s1217_s17 = scalar_lea.vmem %s359_s29, 256  ;;  %p1225_p2 = scmp.lt.s32.totalorder %s359_s29, %s359_s29 }
  0x2f   : > { %p1218_p9 = scmp.ne.s32.totalorder %s359_s29, %s1217_s17  ;;  %p1226_p6 = scmp.lt.s32.totalorder %s1217_s17, %s1217_s17 }
  0x31   : > { %p1220_p10 = pnand %p1218_p9, %p2018_p13  ;;  %p1227_p4 = por %p1226_p6, %p1225_p2 }
  0x33   : > { %p1221_p1 = pneg %p1220_p10 }
  0x35   : > { %p1228_p8 = pnand %p1227_p4, %p1221_p1 }
  0x37   : > { %1231 = shalt.err (!%p1228_p8)
}
  0x38   : > { %s2009_s24 = smov 64   ;;  %s2010_s26 = smov 4  }
  0x39   : > { %1114 = dma.hbm_to_vmem [thread:$0]  (!%p1635_p11), %s2040_s3, 256, %s359_s29, [#allocation9], %s2009_s24, %s2009_s24, %s2010_s26  }
  0x3a   : > { %p49_p1 = scmp.ge.s32.totalorder %s47_s12, 2  ;;  %s56_s14 = sadd.s32 1, %s1488_s19 }
  0x3b   : > { %p63_p2 = scmp.ne.s32.totalorder %s1488_s19, %s1484_s18  ;;  %p64_p4 = scmp.eq.s32.totalorder %s1500_s22, 0 }
  0x3c   : > { %s2080_s12 = smov (%p49_p1, %s47_s12), 0  ;;  %p2042_p8 = scmp.eq.s32.totalorder %s1605_s23, 1 }
  0x3d   : > { %2041 = sst [smem:[#allocation24_spill]] %s2080_s12  ;;  %p65_p6 = por %p64_p4, %p63_p2 }
  0x3e   : > { %p1673_p10 = por %p2042_p8, %p63_p2  ;;  %s51_s16 = ssub.s32 %s1496_s21, %s2080_s12 }
  0x3f   : > { %p1140_p12 = scmp.lt.s32.totalorder %s1500_s22, 2  ;;  %p54_p0 = scmp.eq.s32.totalorder %s51_s16, 0 }
  0x40   : > { %s2043_s15 = scalar_select %p1673_p10, 1, 0 }
  0x41   : > { %s2012_s28 = sand.u32 1, %s1488_s19   ;;  %s1686_s17 = sshll.u32 %s1496_s21, 6 }
  0x42   : > { %s1683_s29 = sshll.u32 %s2012_s28, 2  ;;  %p1691_p3 = pnand %p1140_p12, %p65_p6 }
  0x43   : > { %s1689_s13 = scalar_select %p54_p0, %s1488_s19, %s56_s14  }
  0x44   : > { %s2045_s24 = scalar_select %p1691_p3, 1, 0 }
  0x45   : > { %2044 = sst [smem:[#allocation25_spill]] %s1689_s13  ;;  %s416_s26 = sand.u32 1, %s1500_s22  }
  0x46   : > { %s2046_s1 = sld [smem:[#allocation26_spill]]  ;;  %s420_s28 = scalar_lea.vmem [#allocation5], %s1683_s29 }
  0x47   : > { %s428_s21 = sshll.u32 %s420_s28, 4  ;;  %s1505_s14 = smov [#allocation10]   ;;  %s1703_s21 = int_to_ptr.vmem [resolvable:$true] %s428_s21 }
  0x48   : > { %s1705_s13 = sshll.u32 %s1505_s14, 4  ;;  %s1707_s11 = scalar_lea.sflag [#allocation6], %s416_s26  ;;  %s381_s13 = int_to_ptr.vmem [resolvable:$true] %s1705_s13 }
  0x49   : > { %p1713_p7 = pneg %p1691_p3 }
  0x4b   : > { %s2047_s3 = scalar_select %p1713_p7, 1, 0 }
  0x4c   : > { %s1700_s16 = scalar_lea.hbm %s2046_s1, %s1686_s17  ;;  %s1237_s22 = scalar_lea.hbm %s2046_s1, 128 }
  0x4d   : > { %s1232_s9 = scalar_lea.hbm %s1700_s16, 64  ;;  %p1238_p2 = scmp.lt.u32.totalorder %s1700_s16, %s2046_s1 }
  0x4e   : > { %p1233_p5 = scmp.ne.s32.totalorder %s1700_s16, %s1232_s9  ;;  %p1239_p4 = scmp.lt.u32.totalorder %s1237_s22, %s1232_s9 }
  0x4f   : > { %p1241_p8 = scmp.lt.u32.totalorder %s1232_s9, %s1700_s16 }
  0x50   : > { %p1235_p9 = pnand %p1713_p7, %p1233_p5  ;;  %p1240_p6 = por %p1239_p4, %p1238_p2 }
  0x52   : > { %p1236_p1 = pneg %p1235_p9  ;;  %p1242_p12 = por %p1241_p8, %p1240_p6 }
  0x54   : > { %p1243_p0 = pnand %p1242_p12, %p1236_p1 }
  0x56   : > { %1246 = shalt.err (!%p1243_p0)
}
  0x57   : > { %s1247_s26 = scalar_lea.vmem %s1703_s21, 64  ;;  %s1506_s12 = smov [#allocation5]  }
  0x58   : > { %p1248_p5 = scmp.ne.s32.totalorder %s1703_s21, %s1247_s26  ;;  %s1252_s28 = sshll.u32 %s1506_s12, 4  ;;  %s1253_s28 = int_to_ptr.vmem [resolvable:$false] %s1252_s28 }
  0x59   : > { %s1254_s8 = scalar_lea.vmem %s1253_s28, 128  ;;  %p1255_p10 = scmp.lt.s32.totalorder %s1703_s21, %s1253_s28 }
  0x5a   : > { %p1250_p9 = pnand %p1248_p5, %p1713_p7  ;;  %p1256_p11 = scmp.lt.s32.totalorder %s1254_s8, %s1247_s26 }
  0x5c   : > { %p1251_p13 = pneg %p1250_p9  ;;  %p1257_p2 = por %p1256_p11, %p1255_p10 }
  0x5e   : > { %p1258_p4 = pnand %p1257_p2, %p1251_p13 }
  0x60   : > { %1261 = shalt.err (!%p1258_p4)
}
  0x61   : > { %1124 = dma.hbm_to_vmem [thread:$0]  (!%p1691_p3), %s1700_s16, 64, %s1703_s21, %s1707_s11  }
  0x62   : > { %s2048_s7 = sld [smem:[#allocation28_spill]]  ;;  %p2049_p11 = scmp.ne.s32.totalorder %s2039_s30, 0 }
  0x64   : > { %p2050_p13 = pneg %p2049_p11 }
  0x68   : > { %s1262_s14 = scalar_lea.hbm %s2048_s7, 256 }
  0x69   : > { %p1263_p1 = scmp.ne.s32.totalorder %s2048_s7, %s1262_s14  ;;  %p1269_p8 = scmp.lt.u32.totalorder %s1262_s14, %s2048_s7 }
  0x6b   : > { %p1265_p10 = pnand %p1263_p1, %p2050_p13 }
  0x6d   : > { %p1266_p6 = pneg %p1265_p10 }
  0x6f   : > { %p1271_p12 = pnand %p1269_p8, %p1266_p6 }
  0x71   : > { %1274 = shalt.err (!%p1271_p12)
}
  0x72   : > { %s1275_s21 = scalar_lea.vmem %s381_s13, 256  ;;  %p2051_p5 = pmov %p2050_p13 }
  0x73   : > { %p1276_p0 = scmp.ne.s32.totalorder %s381_s13, %s1275_s21  ;;  %p1283_p4 = scmp.lt.s32.totalorder %s381_s13, %s381_s13 }
  0x74   : > { %p1284_p3 = scmp.lt.s32.totalorder %s1275_s21, %s1275_s21 }
  0x75   : > { %p1278_p9 = pnand %p1276_p0, %p2051_p5 }
  0x76   : > { %p1285_p7 = por %p1284_p3, %p1283_p4 }
  0x77   : > { %p1279_p2 = pneg %p1278_p9 }
  0x79   : > { %p1286_p1 = pnand %p1285_p7, %p1279_p2 }
  0x7b   : > { %1289 = shalt.err (!%p1286_p1)
}
  0x7c   : > { %s2052_s1 = smov 4   ;;  %s2053_s16 = smov 64  }
  0x7d   : > { %1117 = dma.hbm_to_vmem [thread:$0]  (!%p2049_p11), %s2048_s7, 256, %s381_s13, [#allocation9], %s2053_s16, %s2053_s16, %s2052_s1  }
  0x7e   : > { %s1765_s12 = scalar_lea.hbm %s1991_s0, %s1686_s17  ;;  %s401_s30 = scalar_lea.vmem [#allocation2], %s1683_s29 }
  0x7f   : > { %s409_s26 = sshll.u32 %s401_s30, 4  ;;  %s1774_s8 = scalar_lea.hbm %s1993_s2, %s1686_s17  ;;  %s1768_s26 = int_to_ptr.vmem [resolvable:$true] %s409_s26 }
  0x80   : > { %s2054_s9 = sand.u32 1, %s1488_s19   ;;  %s1290_s1 = scalar_lea.hbm %s1765_s12, 64 }
  0x81   : > { %s398_s13 = scalar_lea.sflag [#allocation3], %s2054_s9  ;;  %p1291_p3 = scmp.ne.s32.totalorder %s1765_s12, %s1290_s1 }
  0x82   : > { %p2055_p7 = scmp.ne.s32.totalorder %s2047_s3, 0  ;;  %s1295_s14 = scalar_lea.hbm %s1991_s0, 128 }
  0x83   : > { %p1296_p10 = scmp.lt.u32.totalorder %s1765_s12, %s1991_s0  ;;  %p1297_p6 = scmp.lt.u32.totalorder %s1295_s14, %s1290_s1 }
  0x84   : > { %p1293_p11 = pnand %p1291_p3, %p2055_p7  ;;  %p1299_p12 = scmp.lt.u32.totalorder %s1290_s1, %s1765_s12 }
  0x85   : > { %p1298_p8 = por %p1297_p6, %p1296_p10 }
  0x86   : > { %p1294_p13 = pneg %p1293_p11 }
  0x87   : > { %p1300_p0 = por %p1299_p12, %p1298_p8 }
  0x89   : > { %p1301_p5 = pnand %p1300_p0, %p1294_p13 }
  0x8b   : > { %1304 = shalt.err (!%p1301_p5)
}
  0x8c   : > { %s1305_s17 = scalar_lea.vmem %s1768_s26, 64  ;;  %s1507_s28 = smov [#allocation2]  }
  0x8d   : > { %p1306_p9 = scmp.ne.s32.totalorder %s1768_s26, %s1305_s17  ;;  %s1310_s21 = sshll.u32 %s1507_s28, 4  ;;  %s1311_s21 = int_to_ptr.vmem [resolvable:$false] %s1310_s21 }
  0x8e   : > { %s1312_s7 = scalar_lea.vmem %s1311_s21, 128  ;;  %p1313_p1 = scmp.lt.s32.totalorder %s1768_s26, %s1311_s21 }
  0x8f   : > { %p1308_p2 = pnand %p1306_p9, %p2055_p7  ;;  %p1314_p3 = scmp.lt.s32.totalorder %s1312_s7, %s1305_s17 }
  0x91   : > { %p1309_p4 = pneg %p1308_p2  ;;  %p1315_p11 = por %p1314_p3, %p1313_p1 }
  0x93   : > { %p1316_p10 = pnand %p1315_p11, %p1309_p4 }
  0x95   : > { %1319 = shalt.err (!%p1316_p10)
}
  0x96   : > { %p2056_p13 = scmp.ne.s32.totalorder %s2045_s24, 0  ;;  %s439_s9 = scalar_lea.vmem [#allocation7], %s1683_s29 }
  0x97   : > { %s447_s1 = sshll.u32 %s439_s9, 4  ;;  %s1320_s16 = scalar_lea.hbm %s1774_s8, 64  ;;  %s448_s1 = int_to_ptr.vmem [resolvable:$true] %s447_s1 }
  0x98   : > { %1121 = dma.hbm_to_vmem [thread:$0]  (!%p2056_p13), %s1765_s12, 64, %s1768_s26, %s398_s13  }
  0x99   : > { %p1321_p6 = scmp.ne.s32.totalorder %s1774_s8, %s1320_s16  ;;  %s1325_s30 = scalar_lea.hbm %s1993_s2, 128 }
  0x9a   : > { %p1326_p0 = scmp.lt.u32.totalorder %s1774_s8, %s1993_s2  ;;  %p1327_p5 = scmp.lt.u32.totalorder %s1325_s30, %s1320_s16 }
  0x9b   : > { %p1323_p8 = pnand %p1321_p6, %p2055_p7  ;;  %p1329_p2 = scmp.lt.u32.totalorder %s1320_s16, %s1774_s8 }
  0x9c   : > { %p1328_p9 = por %p1327_p5, %p1326_p0 }
  0x9d   : > { %p1324_p12 = pneg %p1323_p8 }
  0x9e   : > { %p1330_p4 = por %p1329_p2, %p1328_p9 }
  0xa0   : > { %p1331_p1 = pnand %p1330_p4, %p1324_p12 }
  0xa2   : > { %1334 = shalt.err (!%p1331_p1)
}
  0xa3   : > { %s1335_s29 = scalar_lea.vmem %s448_s1, 64  ;;  %s1508_s12 = smov [#allocation7]  }
  0xa4   : > { %p1336_p3 = scmp.ne.s32.totalorder %s448_s1, %s1335_s29  ;;  %s1340_s26 = sshll.u32 %s1508_s12, 4  ;;  %s1341_s26 = int_to_ptr.vmem [resolvable:$false] %s1340_s26 }
  0xa5   : > { %s1342_s13 = scalar_lea.vmem %s1341_s26, 128  ;;  %p1343_p6 = scmp.lt.s32.totalorder %s448_s1, %s1341_s26 }
  0xa6   : > { %p1338_p11 = pnand %p1336_p3, %p2055_p7  ;;  %p1344_p8 = scmp.lt.s32.totalorder %s1342_s13, %s1335_s29 }
  0xa8   : > { %p1339_p10 = pneg %p1338_p11  ;;  %p1345_p13 = por %p1344_p8, %p1343_p6 }
  0xaa   : > { %p1346_p0 = pnand %p1345_p13, %p1339_p10 }
  0xac   : > { %1349 = shalt.err (!%p1346_p0)
}
  0xad   : > { %p2057_p5 = scmp.ne.s32.totalorder %s2045_s24, 0  ;;  %p2058_p12 = scmp.ne.s32.totalorder %s2038_s27, 0 }
  0xae   : > { %s1821_s3 = sand.u32 (!%p2058_p12), 1, %s1484_s18   ;;  %p2059_p7 = scmp.ne.s32.totalorder (!%p2058_p12), %s2035_s25, 0 }
  0xaf   : > { %1127 = dma.hbm_to_vmem [thread:$0]  (!%p2057_p5), %s1774_s8, 64, %s448_s1, %s1707_s11  }
  0xb0   : > { %456 = sbr.rel (%p2058_p12) target bundleno = 479 (0x1df), region = 56  ;;  %s1824_s21 = sshll.u32 (!%p2058_p12), %s1821_s3, 2 }
  0xb1   : > { %s459_s7 = scalar_lea.sflag (!%p2058_p12), [#allocation3], %s1821_s3  ;;  %s462_s9 = scalar_lea.vmem (!%p2058_p12), [#allocation2], %s1824_s21 }
  0xb7   : > { %1459 = dma.done.wait (%p2059_p7), %s459_s7, 64  }
  0xb8   : > { %1461 = vsyncadd (%p2059_p7), %s459_s7, 4294967232  ;;  %s467_s11 = sand.u32 1, %s1605_s23   ;;  %s471_s24 = scalar_lea.vmem [#allocation5], %s1824_s21 }
  0xb9   : > { %s468_s27 = scalar_lea.sflag [#allocation6], %s467_s11 }
  0xba   : > { %1463 = dma.done.wait (%p2059_p7), %s468_s27, 128  }
  0xbb   : > { %1465 = vsyncadd (%p2059_p7), %s468_s27, 4294967168  ;;  %s480_s8 = scalar_lea.vmem [#allocation7], %s1824_s21  ;;  %p2060_p13 = scmp.eq.s32.totalorder %s1605_s23, 0 }
  0xbd   : > { %1467 = dma.done.wait (%p2060_p13), [#allocation9], 512   ;;  %p2061_p9 = pmov %p2060_p13 }
  0xbe   : > { %v1509_v0 = vmov 0.0   ;;  %vm1510_vm0 = vmmov 0   ;;  %v1198_v1 = vld [vmem:[#allocation8] sm:$0xff]   ;;  %v1199_v2 = vld [vmem:[#allocation8 + $0x8] sm:$0xff]   ;;  %v1200_v3 = vld [vmem:[%s1996_s5] sm:$0xff]   ;;  %vm574_vm1 = vcmask 261120  }
  0xbf   : > { %1469 = vsyncadd (%p2061_p9), [#allocation9], 4294966784  ;;  %1067 = vmatprep.subr.bf16.mxu0 %v1509_v0  ;;  %1075 = vmatprep.subr.bf16.mxu1 %v1509_v0  ;;  %v1202_v4 = vld [vmem:[%s1996_s5 + $0x8] sm:$0xff]   ;;  %v548_v5 = vld [vmem:[%s462_s9] sm:$0xf]  ;;  %s1863_s29 = sshll.u32 %s1492_s20, 6 }
  0xc0   : > { %1071 = vmatprep.mubr.msk.bf16.mxu0 %vm1510_vm0, %v1509_v0  ;;  %1079 = vmatprep.mubr.msk.bf16.mxu1 %vm1510_vm0, %v1509_v0  ;;  %v1201_v6 = vld [vmem:[#allocation10] sm:$0xff]   ;;  %v1203_v8 = vld [vmem:[#allocation10 + $0x8] sm:$0xff]   ;;  %s539_s12 = scalar_lea.vmem [#allocation12], %s1824_s21  ;;  %s532_s13 = scalar_lea.vmem [#allocation11], %s1824_s21 }
  0xc1   : > { %1068 = vmatpush3.bf16.msra.mxu0 %v1198_v1  ;;  %1076 = vmatpush3.bf16.msra.mxu1 %v1200_v3  ;;  %v549_v7 = vld [vmem:[%s471_s24] sm:$0xf]  ;;  %v550_v9 = vld [vmem:[%s480_s8] sm:$0xf]  ;;  %s796_s26 = sshll.u32 %s539_s12, 4  ;;  %s782_s7 = sshll.u32 %s532_s13, 4  ;;  %s1873_s26 = int_to_ptr.vmem [resolvable:$true] %s796_s26  ;;  %s1884_s7 = int_to_ptr.vmem [resolvable:$true] %s782_s7 }
  0xc2   : > { %1069 = vmatprep.subr.bf16.mxu0 %v1509_v0  ;;  %1077 = vmatprep.subr.bf16.mxu1 %v1509_v0  ;;  %v1038_v10 = vld [vmem:[%s1995_s4] ss:$0 sm:$0xff]  ;;  %s1871_s20 = scalar_lea.hbm %s2001_s10, %s1863_s29  ;;  %s2062_s25 = sld [smem:[#allocation29_spill]] }
  0xc3   : > { %v1042_v12 = vld [vmem:[%s1997_s6] ss:$0 sm:$0xff]  ;;  %s2063_s22 = sld [smem:[#allocation30_spill]]  ;;  %s546_s17 = scalar_lea.vmem [#allocation14], %s1824_s21 }
  0xc4   : > { %s1889_s28 = sshll.u32 %s546_s17, 4  ;;  %s1893_s9 = scalar_lea.sflag [#allocation13], %s467_s11  ;;  %s811_s28 = int_to_ptr.vmem [resolvable:$true] %s1889_s28 }
  0xc5   : > { %1070 = vmatpush3.bf16.msra.mxu0 %v1199_v2  ;;  %1078 = vmatpush3.bf16.msra.mxu1 %v1202_v4  ;;  %s1350_s27 = scalar_lea.vmem %s1873_s26, 64  ;;  %p2065_p4 = scmp.ne.s32.totalorder %s2043_s15, 0 }
  0xc6   : > { %1083 = vmatprep.subr.bf16.mxu0 %v1509_v0  ;;  %p1351_p2 = scmp.ne.s32.totalorder %s1873_s26, %s1350_s27  ;;  %s1511_s24 = smov [#allocation12]  }
  0xc7   : > { %s1354_s8 = sshll.u32 %s1511_s24, 4  ;;  %s1355_s8 = int_to_ptr.vmem [resolvable:$false] %s1354_s8 }
  0xc8   : > { %1072 = vmatmul.mubr.msk.bf16.vlgmr.msra.gmra.mrb[0].mxu0 %vm574_vm1, %v548_v5  ;;  %1080 = vmatmul.mubr.msk.bf16.vlgmr.msra.gmra.mrb[0].mxu1 %vm574_vm1, %v549_v7  ;;  %v1046_v25 = vld [vmem:[%s2062_s25] ss:$0 sm:$0xff]  ;;  %p1352_p1 = pnand %p1351_p2, %p2065_p4  ;;  %s1356_s25 = scalar_lea.vmem %s1355_s8, 128 }
  0xc9   : > { %1084 = vmatpush3.bf16.msra.mxu0 %v1201_v6  ;;  %1087 = vmatprep.mubr.msk.bf16.mxu0 %vm1510_vm0, %v1509_v0  ;;  %s2064_s14 = smov %s2063_s22  ;;  %s1882_s30 = scalar_lea.hbm %s2063_s22, %s1863_s29 }
  0xca   : > { %1085 = vmatprep.subr.bf16.mxu0 %v1509_v0  ;;  %p1353_p3 = pneg %p1352_p1  ;;  %p1357_p11 = scmp.lt.s32.totalorder %s1873_s26, %s1355_s8 }
  0xcb   : > { %p1358_p10 = scmp.lt.s32.totalorder %s1356_s25, %s1350_s27 }
  0xcd   : > { %1086 = vmatpush3.bf16.msra.mxu0 %v1203_v8  ;;  %p1359_p6 = por %p1358_p10, %p1357_p11 }
  0xcf   : > { %p1360_p8 = pnand %p1359_p6, %p1353_p3 }
  0xd0   : > { %1088 = vmatmul.mubr.msk.bf16.vlgmr.msra.gmra.mrb[4].mxu0 %vm574_vm1, %v550_v9 }
 0x19b   : > { %v612_v11 = vpop.f32.mrb[0].mxu0  ;;  %v678_v16 = vpop.f32.mrb[0].mxu1 }
 0x19c   : > { %v613_v13 = vadd.f32 %v1038_v10, %v612_v11  ;;  %v1073_v14 = vpop.f32.mrb[1].mxu0  ;;  %v679_v19 = vadd.f32 %v1042_v12, %v678_v16  ;;  %v1081_v20 = vpop.f32.mrb[1].mxu1 }
 0x19d   : > { %v615_v15 = vpop.f32.mrb[2].mxu0  ;;  %v681_v21 = vpop.f32.mrb[2].mxu1 }
 0x19e   : > { %v750_v17 = vmul.f32 0.25, %v613_v13  ;;  %v1074_v18 = vpop.f32.mrb[3].mxu0  ;;  %v753_v23 = vpack.c.bf16 %v679_v19, %v679_v19  ;;  %v1082_v24 = vpop.f32.mrb[3].mxu1 }
 0x1a0   : > { %v751_v22 = vpack.c.bf16 %v750_v17, %v750_v17  ;;  %754 = vst [vmem:[%s539_s12] sm:$0xf] %v753_v23 }
 0x1a2   : > { %752 = vst [vmem:[%s532_s13] sm:$0xf] %v751_v22 }
 0x1a3   : > { %v744_v26 = vpop.f32.mrb[4].mxu0 }
 0x1a4   : > { %1363 = shalt.err (!%p1360_p8)
}
 0x1a5   : > { %s1364_s23 = scalar_lea.hbm %s1871_s20, 64  ;;  %s1368_s13 = scalar_lea.hbm %s2001_s10, 128 }
 0x1a6   : > { %p1365_p0 = scmp.ne.s32.totalorder %s1871_s20, %s1364_s23  ;;  %p1369_p7 = scmp.lt.u32.totalorder %s1871_s20, %s2001_s10 }
 0x1a7   : > { %p1370_p13 = scmp.lt.u32.totalorder %s1368_s13, %s1364_s23  ;;  %p1372_p2 = scmp.lt.u32.totalorder %s1364_s23, %s1871_s20 }
 0x1a8   : > { %p1366_p5 = pnand %p1365_p0, %p2065_p4 }
 0x1a9   : > { %p1371_p9 = por %p1370_p13, %p1369_p7 }
 0x1aa   : > { %p1367_p12 = pneg %p1366_p5 }
 0x1ab   : > { %p1373_p1 = por %p1372_p2, %p1371_p9 }
 0x1ad   : > { %p1374_p3 = pnand %p1373_p1, %p1367_p12 }
 0x1af   : > { %1377 = shalt.err (!%p1374_p3)
}
 0x1b0   : > { %1106 = dma.vmem_to_hbm [thread:$0]  (%p2065_p4), %s1873_s26, 64, %s1871_s20, %s1893_s9   ;;  %v745_v27 = vadd.f32 %v1046_v25, %v744_v26  ;;  %v1089_v28 = vpop.f32.mrb[5].mxu0 }
 0x1b1   : > { %s758_s22 = scalar_lea.sflag [#allocation4], %s1821_s3  ;;  %s1378_s27 = scalar_lea.vmem %s1884_s7, 64 }
 0x1b2   : > { %p1379_p11 = scmp.ne.s32.totalorder %s1884_s7, %s1378_s27  ;;  %s1512_s24 = smov [#allocation11]  }
 0x1b3   : > { %s1382_s8 = sshll.u32 %s1512_s24, 4  ;;  %s1383_s8 = int_to_ptr.vmem [resolvable:$false] %s1382_s8 }
 0x1b4   : > { %p1380_p10 = pnand %p1379_p11, %p2065_p4  ;;  %s1384_s25 = scalar_lea.vmem %s1383_s8, 128 }
 0x1b5   : > { %p1385_p8 = scmp.lt.s32.totalorder %s1884_s7, %s1383_s8  ;;  %p1386_p0 = scmp.lt.s32.totalorder %s1384_s25, %s1378_s27 }
 0x1b6   : > { %p1381_p6 = pneg %p1380_p10 }
 0x1b7   : > { %p1387_p5 = por %p1386_p0, %p1385_p8 }
 0x1b9   : > { %p1388_p12 = pnand %p1387_p5, %p1381_p6 }
 0x1bb   : > { %1391 = shalt.err (!%p1388_p12)
}
 0x1bc   : > { %s1392_s3 = scalar_lea.hbm %s1882_s30, 64  ;;  %s1396_s23 = scalar_lea.hbm %s2064_s14, 128 }
 0x1bd   : > { %p1393_p7 = scmp.ne.s32.totalorder %s1882_s30, %s1392_s3  ;;  %p1397_p2 = scmp.lt.u32.totalorder %s1882_s30, %s2064_s14 }
 0x1be   : > { %p1398_p1 = scmp.lt.u32.totalorder %s1396_s23, %s1392_s3  ;;  %p1400_p11 = scmp.lt.u32.totalorder %s1392_s3, %s1882_s30 }
 0x1bf   : > { %p1394_p13 = pnand %p1393_p7, %p2065_p4 }
 0x1c0   : > { %p1399_p3 = por %p1398_p1, %p1397_p2 }
 0x1c1   : > { %p1395_p9 = pneg %p1394_p13 }
 0x1c2   : > { %p1401_p10 = por %p1400_p11, %p1399_p3 }
 0x1c4   : > { %p1402_p6 = pnand %p1401_p10, %p1395_p9 }
 0x1c6   : > { %1405 = shalt.err (!%p1402_p6)
}
 0x1c7   : > { %1105 = dma.vmem_to_hbm [thread:$0]  (%p2065_p4), %s1884_s7, 64, %s1882_s30, %s758_s22   ;;  %v747_v29 = vpop.f32.mrb[6].mxu0  ;;  %v755_v30 = vpack.c.bf16 %v745_v27, %v745_v27 }
 0x1c8   : > { %v1090_v31 = vpop.f32.mrb[7].mxu0  ;;  %s2066_s16 = sld [smem:[#allocation31_spill]]  ;;  %s1406_s24 = scalar_lea.vmem %s811_s28, 64 }
 0x1c9   : > { %756 = vst [vmem:[%s546_s17] sm:$0xf] %v755_v30  ;;  %p1407_p8 = scmp.ne.s32.totalorder %s811_s28, %s1406_s24  ;;  %s1513_s8 = smov [#allocation14]  }
 0x1ca   : > { %s1410_s25 = sshll.u32 %s1513_s8, 4  ;;  %s1411_s25 = int_to_ptr.vmem [resolvable:$false] %s1410_s25 }
 0x1cb   : > { %p1408_p0 = pnand %p1407_p8, %p2065_p4  ;;  %s1412_s7 = scalar_lea.vmem %s1411_s25, 128 }
 0x1cc   : > { %p1413_p12 = scmp.lt.s32.totalorder %s811_s28, %s1411_s25  ;;  %p1414_p7 = scmp.lt.s32.totalorder %s1412_s7, %s1406_s24 }
 0x1cd   : > { %p1409_p5 = pneg %p1408_p0 }
 0x1ce   : > { %s1943_s27 = scalar_lea.hbm %s2066_s16, %s1863_s29  ;;  %p1415_p13 = por %p1414_p7, %p1413_p12 }
 0x1d0   : > { %p1416_p9 = pnand %p1415_p13, %p1409_p5 }
 0x1d2   : > { %1419 = shalt.err (!%p1416_p9)
}
 0x1d3   : > { %s1420_s21 = scalar_lea.hbm %s1943_s27, 64  ;;  %s1424_s17 = scalar_lea.hbm %s2066_s16, 128 }
 0x1d4   : > { %p1421_p2 = scmp.ne.s32.totalorder %s1943_s27, %s1420_s21  ;;  %p1425_p11 = scmp.lt.u32.totalorder %s1943_s27, %s2066_s16 }
 0x1d5   : > { %p1426_p10 = scmp.lt.u32.totalorder %s1424_s17, %s1420_s21  ;;  %p1428_p8 = scmp.lt.u32.totalorder %s1420_s21, %s1943_s27 }
 0x1d6   : > { %p1422_p1 = pnand %p1421_p2, %p2065_p4 }
 0x1d7   : > { %p1427_p6 = por %p1426_p10, %p1425_p11 }
 0x1d8   : > { %p1423_p3 = pneg %p1422_p1 }
 0x1d9   : > { %p1429_p0 = por %p1428_p8, %p1427_p6 }
 0x1db   : > { %p1430_p5 = pnand %p1429_p0, %p1423_p3 }
 0x1dd   : > { %1433 = shalt.err (!%p1430_p5)
}
 0x1de   : > { %1107 = dma.vmem_to_hbm [thread:$0]  (%p2065_p4), %s811_s28, 64, %s1943_s27, %s1893_s9  }
 0x1df PF: > { %s2067_s26 = sld [smem:[#allocation20_spill]]  ;;  %s2068_s20 = sld [smem:[#allocation23_spill]] }
 0x1e0   : > { %s2069_s23 = sld [smem:[#allocation22_spill]] }
 0x1e5   : > { %s822_s11 = sand.u32 1, %s2067_s26   ;;  %p2070_p12 = scmp.ne.s32.totalorder %s2068_s20, 0 }
 0x1e6   : > { %p2071_p7 = scmp.ge.s32.totalorder %s2069_s23, 2  ;;  %s823_s12 = scalar_lea.sflag [#allocation4], %s822_s11 }
 0x1e8   : > { %p1129_p13 = pnand %p2071_p7, %p2070_p12 }
 0x1ea   : > { %1471 = dma.done.wait (!%p1129_p13), %s823_s12, 64  }
 0x1eb   : > { %1473 = vsyncadd (!%p1129_p13), %s823_s12, 4294967232  ;;  %s2072_s13 = sadd.s32 4294967294, %s2069_s23  }
 0x1ec   : > { %s831_s1 = sand.u32 1, %s2072_s13  }
 0x1ed   : > { %s832_s24 = scalar_lea.sflag [#allocation13], %s831_s1 }
 0x1ee   : > { %1475 = dma.done.wait (!%p1129_p13), %s832_s24, 128  }
 0x1ef   : > { %1477 = vsyncadd (!%p1129_p13), %s832_s24, 4294967168  ;;  %s35_s22 = sadd.s32 1, %s2069_s23   ;;  %s2073_s15 = sld [smem:[#allocation25_spill]] }
 0x1f0   : > { %p32_p4 = scmp.ge.s32.totalorder %s35_s22, 4   ;;  %s2074_s20 = sld [smem:[#allocation21_spill]] }
 0x1f1   : > { %s2075_s21 = sld [smem:[#allocation24_spill]]  ;;  %s2076_s17 = smov %s1484_s18 }
 0x1f2   : > { %s2077_s18 = smov %s1488_s19  ;;  %34 = sbr.rel (!%p32_p4) target bundleno = 18 (0x12), region = 165 }
 0x1f5   : > { %s2078_s19 = smov %s2073_s15 }
 0x1f9   :  { %846 = vsyncpa [#allocation3], 1 }
 0x1fa   :  { %848 = vsyncpa [#allocation3 + $0x1], 1 }
 0x1fb   :  { %849 = vsyncpa [#allocation6], 1 }
 0x1fc   :  { %851 = vsyncpa [#allocation6 + $0x1], 1 }
 0x1fd   :  { %852 = vsyncpa [#allocation9], 1 }
 0x1fe   :  { %853 = vsyncpa [#allocation4], 1 }
 0x1ff   :  { %855 = vsyncpa [#allocation4 + $0x1], 1 }
 0x200   :  { %856 = vsyncpa [#allocation13], 1 }
 0x201   :  { %858 = vsyncpa [#allocation13 + $0x1], 1 }

</bundles_post_ra>
